<compile_context>
chip_gen: v7x
topology: tpu7x:2x2x1
jax: 0.10.0
libtpu: 0.0.40
codegen_flags: <defaults>
</compile_context>

<pallas_src>
import jax
import jax.numpy as jnp
from jax import lax
from jax.experimental import pallas as pl
from jax.experimental.pallas import tpu as pltpu

# ---- config (mirrors cfg / space_info for obs_type='vec') -------------------
OBS_SIZE = 24            # space_info['shape']['obs'][0]
REMOVE_VELOCITY = True   # cfg.remove_velocity
DIMS_TO_KEEP = 12        # cfg.dims_to_keep
HIDDEN = 32              # cfg.hidden_size
FEAT = 16                # cfg.feat_size
N_LAYERS = 3             # cfg.n_layers  (-> 2x [Linear,BN,Tanh] + final Linear)
BN_EPS = 1e-5
BATCH = 8

IN_SIZE = DIMS_TO_KEEP if REMOVE_VELOCITY else OBS_SIZE


def _pad8(n):
    return ((n + 7) // 8) * 8


# Packed weight-slab layout (rows, all HIDDEN lanes wide, unused entries = 0):
W0_PAD = _pad8(IN_SIZE)          # w0 rows [0, IN_SIZE), zero-pad to 16
W1_OFF = W0_PAD                  # w1 rows [16, 48)
W2_OFF = W1_OFF + HIDDEN         # w2 rows [48, 80), cols [0, FEAT) used
W_ROWS = W2_OFF + HIDDEN         # 80 total rows
assert W0_PAD <= OBS_SIZE        # x[:, :W0_PAD] is a valid in-kernel slice

# Packed vector-params slab: 8 rows x HIDDEN lanes.
# rows: 0=b0 1=g0 2=be0 3=b1 4=g1 5=be1 6=b2(padded to HIDDEN) 7=unused


# ---- kernel ------------------------------------------------------------------
def _linear_bn_tanh(h, w, b, gamma, beta):
    # Linear (MXU, f32 accumulation)
    y = jnp.dot(h, w, preferred_element_type=jnp.float32) + b
    # BatchNorm1d training-mode stats (biased), one data pass:
    #   var = E[y^2] - mean^2, affine folded into scale/shift.
    mean = jnp.mean(y, axis=0, keepdims=True)
    ex2 = jnp.mean(y * y, axis=0, keepdims=True)
    var = ex2 - mean * mean
    s = gamma * lax.rsqrt(var + BN_EPS)          # (1, HIDDEN) scale
    t = beta - mean * s                          # (1, HIDDEN) shift
    return jnp.tanh(y * s + t)                   # VPU + EUP


def feature_encoder_kernel(x_ref, w_ref, v_ref, o_ref):
    x = x_ref[...]                               # (B, OBS_SIZE)
    w = w_ref[...]                               # (W_ROWS, HIDDEN) packed
    v = v_ref[...]                               # (8, HIDDEN) packed

    # remove_velocity: slice done in-kernel; rows [IN_SIZE, W0_PAD) of the
    # weight slab are zero, so using the sublane-aligned width W0_PAD is exact.
    h = x[:, :W0_PAD]

    w0 = w[:W0_PAD, :]
    w1 = w[W1_OFF:W1_OFF + HIDDEN, :]
    w2 = w[W2_OFF:W2_OFF + HIDDEN, :]            # cols >= FEAT are zero

    h = _linear_bn_tanh(h, w0, v[0:1, :], v[1:2, :], v[2:3, :])
    h = _linear_bn_tanh(h, w1, v[3:4, :], v[4:5, :], v[5:6, :])

    y = jnp.dot(h, w2, preferred_element_type=jnp.float32) + v[6:7, :]
    o_ref[...] = y[:, :FEAT]


# ---- parameter init (deterministic, PyTorch-style uniform bounds) ------------
def init_params(key):
    ks = jax.random.split(key, 6)

    def lin(kw, kb, fan_in, fan_out):
        bound = 1.0 / (fan_in ** 0.5)
        w = jax.random.uniform(kw, (fan_in, fan_out), jnp.float32, -bound, bound)
        b = jax.random.uniform(kb, (1, fan_out), jnp.float32, -bound, bound)
        return w, b

    w0, b0 = lin(ks[0], ks[1], IN_SIZE, HIDDEN)
    w1, b1 = lin(ks[2], ks[3], HIDDEN, HIDDEN)
    w2, b2 = lin(ks[4], ks[5], HIDDEN, FEAT)
    return dict(
        w0=w0, b0=b0, g0=jnp.ones((1, HIDDEN), jnp.float32),
        be0=jnp.zeros((1, HIDDEN), jnp.float32),
        w1=w1, b1=b1, g1=jnp.ones((1, HIDDEN), jnp.float32),
        be1=jnp.zeros((1, HIDDEN), jnp.float32),
        w2=w2, b2=b2,
    )


def pack_params(p):
    """One-time packing of the 10 parameter tensors into 2 slabs."""
    w_slab = jnp.zeros((W_ROWS, HIDDEN), jnp.float32)
    w_slab = w_slab.at[:IN_SIZE, :].set(p["w0"])
    w_slab = w_slab.at[W1_OFF:W1_OFF + HIDDEN, :].set(p["w1"])
    w_slab = w_slab.at[W2_OFF:W2_OFF + HIDDEN, :FEAT].set(p["w2"])

    v_slab = jnp.zeros((8, HIDDEN), jnp.float32)
    v_slab = v_slab.at[0, :].set(p["b0"][0])
    v_slab = v_slab.at[1, :].set(p["g0"][0])
    v_slab = v_slab.at[2, :].set(p["be0"][0])
    v_slab = v_slab.at[3, :].set(p["b1"][0])
    v_slab = v_slab.at[4, :].set(p["g1"][0])
    v_slab = v_slab.at[5, :].set(p["be1"][0])
    v_slab = v_slab.at[6, :FEAT].set(p["b2"][0])
    return w_slab, v_slab


# ---- wrapper -----------------------------------------------------------------
def feature_encoder_forward(x, w_slab, v_slab):
    # Whole problem fits in VMEM; no grid (keeps BN batch statistics exact).
    return pl.pallas_call(
        feature_encoder_kernel,
        out_shape=jax.ShapeDtypeStruct((x.shape[0], FEAT), jnp.float32),
        in_specs=[pl.BlockSpec(memory_space=pltpu.MemorySpace.VMEM)
                  for _ in range(3)],
        out_specs=pl.BlockSpec(memory_space=pltpu.MemorySpace.VMEM),
    )(x, w_slab, v_slab)


# ---- pure-JAX reference (PyTorch semantics, unpacked params) ------------------
def reference_forward(x, p):
    if REMOVE_VELOCITY:
        x = x[:, :DIMS_TO_KEEP]

    def block(h, w, b, g, be):
        y = h @ w + b
        mean = jnp.mean(y, axis=0, keepdims=True)
        var = jnp.mean((y - mean) ** 2, axis=0, keepdims=True)
        return jnp.tanh((y - mean) / jnp.sqrt(var + BN_EPS) * g + be)

    h = block(x, p["w0"], p["b0"], p["g0"], p["be0"])
    h = block(h, p["w1"], p["b1"], p["g1"], p["be1"])
    return h @ p["w2"] + p["b2"]


if __name__ == "__main__":
    key = jax.random.PRNGKey(0)
    kx, kp = jax.random.split(key)
    x = jax.random.normal(kx, (BATCH, OBS_SIZE), dtype=jnp.float32)
    params = init_params(kp)
    w_slab, v_slab = pack_params(params)   # done once, outside the hot path

    out = feature_encoder_forward(x, w_slab, v_slab)
    out = jax.block_until_ready(out)

    ref = reference_forward(x, params)
    assert out.shape == (BATCH, FEAT)
    assert jnp.allclose(out, ref, atol=2e-5, rtol=1e-5)

    print("KERNEL_OK")
</pallas_src>

<mosaic_0001>
module attributes {stable_mosaic.version = 11 : i64} {
  func.func @feature_encoder_kernel(%arg0: memref<8x24xf32, #tpu.memory_space<vmem>>, %arg1: memref<80x32xf32, #tpu.memory_space<vmem>>, %arg2: memref<8x32xf32, #tpu.memory_space<vmem>>, %arg3: memref<8x16xf32, #tpu.memory_space<vmem>>) attributes {dimension_semantics = [], scalar_prefetch = 0 : i64, scratch_operands = 0 : i64, tpu.core_type = #tpu.core_type<tc>} {
    %c0 = arith.constant 0 : index
    %c0_0 = arith.constant 0 : index
    %0 = vector.load %arg0[%c0, %c0_0] : memref<8x24xf32, #tpu.memory_space<vmem>>, vector<8x24xf32>
    %c0_1 = arith.constant 0 : index
    %c0_2 = arith.constant 0 : index
    %1 = vector.load %arg1[%c0_1, %c0_2] : memref<80x32xf32, #tpu.memory_space<vmem>>, vector<80x32xf32>
    %c0_3 = arith.constant 0 : index
    %c0_4 = arith.constant 0 : index
    %2 = vector.load %arg2[%c0_3, %c0_4] : memref<8x32xf32, #tpu.memory_space<vmem>>, vector<8x32xf32>
    %3 = vector.extract_strided_slice %0 {offsets = [0, 0], sizes = [8, 16], strides = [1, 1]} : vector<8x24xf32> to vector<8x16xf32>
    %4 = vector.extract_strided_slice %1 {offsets = [0, 0], sizes = [16, 32], strides = [1, 1]} : vector<80x32xf32> to vector<16x32xf32>
    %5 = vector.extract_strided_slice %1 {offsets = [16, 0], sizes = [32, 32], strides = [1, 1]} : vector<80x32xf32> to vector<32x32xf32>
    %6 = vector.extract_strided_slice %1 {offsets = [48, 0], sizes = [32, 32], strides = [1, 1]} : vector<80x32xf32> to vector<32x32xf32>
    %7 = vector.extract_strided_slice %2 {offsets = [0, 0], sizes = [1, 32], strides = [1, 1]} : vector<8x32xf32> to vector<1x32xf32>
    %8 = vector.extract_strided_slice %2 {offsets = [1, 0], sizes = [1, 32], strides = [1, 1]} : vector<8x32xf32> to vector<1x32xf32>
    %9 = vector.extract_strided_slice %2 {offsets = [2, 0], sizes = [1, 32], strides = [1, 1]} : vector<8x32xf32> to vector<1x32xf32>
    %cst = arith.constant dense<0.000000e+00> : vector<8x32xf32>
    %10 = tpu.matmul %3, %4, %cst {dimension_numbers = #tpu.dot_dimension_numbers<[1], [0], [0], [1], [0, 0, 1, 1], [], []>} : vector<8x16xf32>, vector<16x32xf32>, vector<8x32xf32> -> vector<8x32xf32>
    %11 = vector.broadcast %7 : vector<1x32xf32> to vector<8x32xf32>
    %12 = arith.addf %10, %11 : vector<8x32xf32>
    %cst_5 = arith.constant dense<0.000000e+00> : vector<32xf32>
    %13 = vector.multi_reduction <add>, %12, %cst_5 [0] : vector<8x32xf32> to vector<32xf32>
    %14 = vector.shape_cast %13 : vector<32xf32> to vector<1x32xf32>
    %cst_6 = arith.constant 8.000000e+00 : f32
    %15 = vector.broadcast %cst_6 : f32 to vector<1x32xf32>
    %16 = arith.divf %14, %15 : vector<1x32xf32>
    %17 = arith.mulf %12, %12 : vector<8x32xf32>
    %cst_7 = arith.constant dense<0.000000e+00> : vector<32xf32>
    %18 = vector.multi_reduction <add>, %17, %cst_7 [0] : vector<8x32xf32> to vector<32xf32>
    %19 = vector.shape_cast %18 : vector<32xf32> to vector<1x32xf32>
    %cst_8 = arith.constant 8.000000e+00 : f32
    %20 = vector.broadcast %cst_8 : f32 to vector<1x32xf32>
    %21 = arith.divf %19, %20 : vector<1x32xf32>
    %22 = arith.mulf %16, %16 : vector<1x32xf32>
    %23 = arith.subf %21, %22 : vector<1x32xf32>
    %cst_9 = arith.constant 9.99999974E-6 : f32
    %24 = vector.broadcast %cst_9 : f32 to vector<1x32xf32>
    %25 = arith.addf %23, %24 : vector<1x32xf32>
    %26 = math.rsqrt %25 : vector<1x32xf32>
    %27 = arith.mulf %8, %26 : vector<1x32xf32>
    %28 = arith.mulf %16, %27 : vector<1x32xf32>
    %29 = arith.subf %9, %28 : vector<1x32xf32>
    %30 = vector.broadcast %27 : vector<1x32xf32> to vector<8x32xf32>
    %31 = arith.mulf %12, %30 : vector<8x32xf32>
    %32 = vector.broadcast %29 : vector<1x32xf32> to vector<8x32xf32>
    %33 = arith.addf %31, %32 : vector<8x32xf32>
    %34 = math.tanh %33 : vector<8x32xf32>
    %35 = vector.extract_strided_slice %2 {offsets = [3, 0], sizes = [1, 32], strides = [1, 1]} : vector<8x32xf32> to vector<1x32xf32>
    %36 = vector.extract_strided_slice %2 {offsets = [4, 0], sizes = [1, 32], strides = [1, 1]} : vector<8x32xf32> to vector<1x32xf32>
    %37 = vector.extract_strided_slice %2 {offsets = [5, 0], sizes = [1, 32], strides = [1, 1]} : vector<8x32xf32> to vector<1x32xf32>
    %cst_10 = arith.constant dense<0.000000e+00> : vector<8x32xf32>
    %38 = tpu.matmul %34, %5, %cst_10 {dimension_numbers = #tpu.dot_dimension_numbers<[1], [0], [0], [1], [0, 0, 1, 1], [], []>} : vector<8x32xf32>, vector<32x32xf32>, vector<8x32xf32> -> vector<8x32xf32>
    %39 = vector.broadcast %35 : vector<1x32xf32> to vector<8x32xf32>
    %40 = arith.addf %38, %39 : vector<8x32xf32>
    %cst_11 = arith.constant dense<0.000000e+00> : vector<32xf32>
    %41 = vector.multi_reduction <add>, %40, %cst_11 [0] : vector<8x32xf32> to vector<32xf32>
    %42 = vector.shape_cast %41 : vector<32xf32> to vector<1x32xf32>
    %cst_12 = arith.constant 8.000000e+00 : f32
    %43 = vector.broadcast %cst_12 : f32 to vector<1x32xf32>
    %44 = arith.divf %42, %43 : vector<1x32xf32>
    %45 = arith.mulf %40, %40 : vector<8x32xf32>
    %cst_13 = arith.constant dense<0.000000e+00> : vector<32xf32>
    %46 = vector.multi_reduction <add>, %45, %cst_13 [0] : vector<8x32xf32> to vector<32xf32>
    %47 = vector.shape_cast %46 : vector<32xf32> to vector<1x32xf32>
    %cst_14 = arith.constant 8.000000e+00 : f32
    %48 = vector.broadcast %cst_14 : f32 to vector<1x32xf32>
    %49 = arith.divf %47, %48 : vector<1x32xf32>
    %50 = arith.mulf %44, %44 : vector<1x32xf32>
    %51 = arith.subf %49, %50 : vector<1x32xf32>
    %cst_15 = arith.constant 9.99999974E-6 : f32
    %52 = vector.broadcast %cst_15 : f32 to vector<1x32xf32>
    %53 = arith.addf %51, %52 : vector<1x32xf32>
    %54 = math.rsqrt %53 : vector<1x32xf32>
    %55 = arith.mulf %36, %54 : vector<1x32xf32>
    %56 = arith.mulf %44, %55 : vector<1x32xf32>
    %57 = arith.subf %37, %56 : vector<1x32xf32>
    %58 = vector.broadcast %55 : vector<1x32xf32> to vector<8x32xf32>
    %59 = arith.mulf %40, %58 : vector<8x32xf32>
    %60 = vector.broadcast %57 : vector<1x32xf32> to vector<8x32xf32>
    %61 = arith.addf %59, %60 : vector<8x32xf32>
    %62 = math.tanh %61 : vector<8x32xf32>
    %cst_16 = arith.constant dense<0.000000e+00> : vector<8x32xf32>
    %63 = tpu.matmul %62, %6, %cst_16 {dimension_numbers = #tpu.dot_dimension_numbers<[1], [0], [0], [1], [0, 0, 1, 1], [], []>} : vector<8x32xf32>, vector<32x32xf32>, vector<8x32xf32> -> vector<8x32xf32>
    %64 = vector.extract_strided_slice %2 {offsets = [6, 0], sizes = [1, 32], strides = [1, 1]} : vector<8x32xf32> to vector<1x32xf32>
    %65 = vector.broadcast %64 : vector<1x32xf32> to vector<8x32xf32>
    %66 = arith.addf %63, %65 : vector<8x32xf32>
    %67 = vector.extract_strided_slice %66 {offsets = [0, 0], sizes = [8, 16], strides = [1, 1]} : vector<8x32xf32> to vector<8x16xf32>
    %c0_17 = arith.constant 0 : index
    %c0_18 = arith.constant 0 : index
    %68 = vector.load %arg3[%c0_17, %c0_18] : memref<8x16xf32, #tpu.memory_space<vmem>>, vector<8x16xf32>
    tpu.vector_store %arg3[%c0_17, %c0_18], %67 {strides = array<i32>} : memref<8x16xf32, #tpu.memory_space<vmem>>, vector<8x16xf32>,
    return
  }
}

</mosaic_0001>

<bundles_post_ra>
// kernel: tpu_custom_call.1
= control target key start
LH: loop header
LB: loop body
LE: loop exit
PB: predicated region body
PF: predicated region fallthrough
CT: control target
= control target key end

     0   :  { %v448_v2 = vmov 0.0|0.0   ;;  %vm449_vm0 = vmmov 0   ;;  %v450_v4 = vmov 0.0   ;;  %s551_s0 = inlined_call_operand.vmem [shape: f32[8,24], index: 0, kind: input, shape index: {}]   ;;  %s552_s1 = inlined_call_operand.vmem [shape: f32[80,32], index: 1, kind: input, shape index: {}]   ;;  %s553_s2 = inlined_call_operand.vmem [shape: f32[8,32], index: 2, kind: input, shape index: {}]   ;;  %s554_s3 = inlined_call_operand.hbm [shape: f32[8,16], index: 3, kind: output, shape index: {}]  }
   0x1   :  { %v16_v0 = vld [vmem:[%s552_s1] sm:$0xff]  ;;  %v17_v1 = vld [vmem:[%s552_s1 + $0x8] sm:$0xff]  ;;  %397 = vmatprep.subr.bf16.mxu0 %v448_v2  ;;  %372 = vmatprep.mubr.msk.f32.mxu0 %vm449_vm0, %v450_v4 }
   0x2   :  { %v398_v3 = vpack.c.bf16 %v17_v1, %v16_v0 }
   0x3   :  { %8 = vsyncpa [#allocation3], 0  ;;  %400 = vmatprep.subr.bf16.mxu1 %v448_v2  ;;  %383 = vmatprep.mubr.msk.f32.mxu1 %vm449_vm0, %v450_v4  ;;  %v15_v5 = vld [vmem:[%s551_s0] sm:$0xff]  ;;  %vm31_vm1 = vcmask 130048   ;;  %v18_v6 = vld [vmem:[%s552_s1 + $0x10] sm:$0xff]  ;;  %v27_v12 = vlaneseq  ;;  %vm105_vm2 = vcmask 261120  }
   0x4   :  { %399 = vmatpush3.bf16.msra.mxu0 %v398_v3  ;;  %v19_v7 = vld [vmem:[%s552_s1 + $0x18] sm:$0xff]  ;;  %v20_v8 = vld [vmem:[%s552_s1 + $0x20] sm:$0xff]  ;;  %v21_v10 = vld [vmem:[%s552_s1 + $0x28] sm:$0xff] }
   0x5   :  { %406 = vmatprep.subr.bf16.mxu0 %v448_v2  ;;  %v401_v9 = vpack.c.bf16 %v19_v7, %v18_v6  ;;  %v404_v11 = vpack.c.bf16 %v21_v10, %v20_v8  ;;  %v498_v13 = vshrl.u32 %v27_v12, 7  ;;  %v504_v15 = vld [vmem:[%s553_s2] sm:$0xff]  ;;  %v22_v52 = vld [vmem:[%s552_s1 + $0x30] sm:$0xff]  ;;  %v23_v53 = vld [vmem:[%s552_s1 + $0x38] sm:$0xff] }
   0x6   :  { %v24_v54 = vld [vmem:[%s552_s1 + $0x40] sm:$0xff]  ;;  %v407_v55 = vpack.c.bf16 %v23_v53, %v22_v52  ;;  %v25_v56 = vld [vmem:[%s552_s1 + $0x48] sm:$0xff]  ;;  %s451_s1 = smov [#allocation2]  }
   0x7   :  { %373 = vmatmul.mubr.msk.f32.vlgmr.msra.gmra.mrb[0].mxu0 %vm31_vm1, %v15_v5  ;;  %402 = vmatpush3.bf16.msra.mxu1 %v401_v9  ;;  %v29_v14 = vsub.s32 0, %v498_v13  ;;  %v136_v42 = vsub.s32 1, %v498_v13  ;;  %v141_v46 = vsub.s32 2, %v498_v13  ;;  %v410_v57 = vpack.c.bf16 %v25_v56, %v24_v54  ;;  %s344_s7 = sshll.u32 %s451_s1, 4  ;;  %s345_s7 = int_to_ptr.vmem [resolvable:$true] %s344_s7 }
   0x8   :  { %394 = vmatprep.mubr.msk.f32.mxu0 %vm449_vm0, %v450_v4  ;;  %403 = vmatprep.subr.bf16.mxu1 %v448_v2  ;;  %v147_v58 = vsub.s32 3, %v498_v13  ;;  %s424_s8 = scalar_lea.vmem %s345_s7, 128  ;;  %p429_p1 = scmp.lt.s32.totalorder %s345_s7, %s345_s7 }
   0x9   :  { %v30_v16 = vrot.slane %v504_v15, %v29_v14  ;;  %408 = vmatpush3.bf16.msra.mxu0 %v407_v55  ;;  %p425_p0 = scmp.ne.s32.totalorder %s345_s7, %s424_s8  ;;  %p430_p2 = scmp.lt.s32.totalorder %s424_s8, %s424_s8 }
   0xa   :  { %409 = vmatprep.subr.bf16.mxu0 %v448_v2  ;;  %v148_v59 = vrot.slane %v504_v15, %v147_v58 }
   0xb   :  { %405 = vmatpush3.bf16.msra.mxu1 %v404_v11  ;;  %p431_p3 = por %p430_p2, %p429_p1 }
   0xd   :  { %411 = vmatpush3.bf16.msra.mxu0 %v410_v57  ;;  %p432_p4 = pnand %p431_p3, %p425_p0 }
  0xda   :  { %v101_v17 = vpop.f32.mrb[0].mxu0 }
  0xdb   :  { %v102_v18 = vadd.f32 %v101_v17, %v30_v16  ;;  %v374_v19 = vpop.f32.mrb[1].mxu0 }
  0xdd   :  { %v106_v20 = vsel %vm105_vm2, %v102_v18, 0.0  ;;  %v115_v21 = vmul.f32 %v102_v18, %v102_v18 }
  0xde   :  { %v107_v22 = vrot.slane %v106_v20, 4 }
  0xdf   :  { %v116_v23 = vsel %vm105_vm2, %v115_v21, 0.0 }
  0xe0   :  { %v108_v24 = vadd.f32 %v107_v22, %v106_v20  ;;  %v117_v25 = vrot.slane %v116_v23, 4 }
  0xe2   :  { %v109_v26 = vrot.slane %v108_v24, 2  ;;  %v118_v27 = vadd.f32 %v117_v25, %v116_v23  ;;  %v251_v23 = vsub.s32 4, %v498_v13 }
  0xe4   :  { %v110_v28 = vadd.f32 %v109_v26, %v108_v24  ;;  %v119_v29 = vrot.slane %v118_v27, 2 }
  0xe6   :  { %v111_v30 = vrot.slane %v110_v28, 1  ;;  %v120_v31 = vadd.f32 %v119_v29, %v118_v27  ;;  %v256_v27 = vsub.s32 5, %v498_v13 }
  0xe8   :  { %v112_v32 = vadd.f32 %v111_v30, %v110_v28  ;;  %v121_v33 = vrot.slane %v120_v31, 1 }
  0xea   :  { %v114_v34 = vmul.f32 0.125, %v112_v32  ;;  %v122_v35 = vadd.f32 %v121_v33, %v120_v31  ;;  %v262_v33 = vsub.s32 6, %v498_v13 }
  0xec   :  { %v123_v36 = vmul.f32 0.125, %v122_v35  ;;  %v124_v37 = vmul.f32 %v114_v34, %v114_v34 }
  0xee   :  { %v125_v38 = vsub.f32 %v123_v36, %v124_v37 }
  0xf0   :  { %v126_v39 = vadd.f32 1e-05, %v125_v38 }
  0xf2   :  { %416 = vrsqrt.f32 %v126_v39 }
  0xfc   :  { %v417_v40 = vpop.eup %416 }
  0xfd   :  { %v128_v41 = vmul.f32 %v417_v40, %v504_v15 }
  0xff   :  { %v129_v43 = vmul.f32 %v128_v41, %v114_v34  ;;  %v137_v45 = vrot.slane %v128_v41, %v136_v42  ;;  %v263_v34 = vrot.slane %v504_v15, %v262_v33 }
 0x101   :  { %v131_v44 = vrot.slane %v129_v43, 7  ;;  %v138_v48 = vmul.f32 %v137_v45, %v102_v18 }
 0x103   :  { %v133_v47 = vsub.f32 %v504_v15, %v131_v44 }
 0x105   :  { %v142_v49 = vrot.slane %v133_v47, %v141_v46 }
 0x107   :  { %v143_v50 = vadd.f32 %v142_v49, %v138_v48 }
 0x109   :  { %418 = vtanh.f32 %v143_v50 }
 0x113   :  { %v419_v51 = vpop.eup %418 }
 0x114   :  { %384 = vmatmul.mubr.msk.f32.vlgmr.msra.gmra.mrb[0].mxu1 %vm105_vm2, %v419_v51 }
 0x1e7   :  { %v218_v60 = vpop.f32.mrb[0].mxu1 }
 0x1e8   :  { %v219_v61 = vadd.f32 %v218_v60, %v148_v59  ;;  %v385_v62 = vpop.f32.mrb[1].mxu1 }
 0x1ea   :  { %v222_v63 = vsel %vm105_vm2, %v219_v61, 0.0  ;;  %v230_v0 = vmul.f32 %v219_v61, %v219_v61 }
 0x1eb   :  { %v223_v1 = vrot.slane %v222_v63, 4 }
 0x1ec   :  { %v231_v3 = vsel %vm105_vm2, %v230_v0, 0.0 }
 0x1ed   :  { %v224_v4 = vadd.f32 %v223_v1, %v222_v63  ;;  %v232_v5 = vrot.slane %v231_v3, 4 }
 0x1ef   :  { %v225_v6 = vrot.slane %v224_v4, 2  ;;  %v233_v7 = vadd.f32 %v232_v5, %v231_v3 }
 0x1f1   :  { %v226_v8 = vadd.f32 %v225_v6, %v224_v4  ;;  %v234_v2 = vrot.slane %v233_v7, 2 }
 0x1f3   :  { %v227_v9 = vrot.slane %v226_v8, 1  ;;  %v235_v10 = vadd.f32 %v234_v2, %v233_v7 }
 0x1f5   :  { %v228_v11 = vadd.f32 %v227_v9, %v226_v8  ;;  %v236_v12 = vrot.slane %v235_v10, 1 }
 0x1f7   :  { %v229_v14 = vmul.f32 0.125, %v228_v11  ;;  %v237_v16 = vadd.f32 %v236_v12, %v235_v10 }
 0x1f9   :  { %v238_v17 = vmul.f32 0.125, %v237_v16  ;;  %v239_v18 = vmul.f32 %v229_v14, %v229_v14 }
 0x1fb   :  { %v240_v19 = vsub.f32 %v238_v17, %v239_v18 }
 0x1fd   :  { %v241_v20 = vadd.f32 1e-05, %v240_v19 }
 0x1ff   :  { %420 = vrsqrt.f32 %v241_v20 }
 0x209   :  { %v421_v21 = vpop.eup %420 }
 0x20a   :  { %v243_v22 = vmul.f32 %v421_v21, %v504_v15 }
 0x20c   :  { %v244_v24 = vmul.f32 %v243_v22, %v229_v14  ;;  %v252_v26 = vrot.slane %v243_v22, %v251_v23 }
 0x20e   :  { %v246_v25 = vrot.slane %v244_v24, 7  ;;  %v253_v29 = vmul.f32 %v252_v26, %v219_v61 }
 0x210   :  { %v248_v28 = vsub.f32 %v504_v15, %v246_v25 }
 0x212   :  { %v257_v30 = vrot.slane %v248_v28, %v256_v27 }
 0x214   :  { %v258_v31 = vadd.f32 %v257_v30, %v253_v29 }
 0x216   :  { %422 = vtanh.f32 %v258_v31 }
 0x220   :  { %v423_v32 = vpop.eup %422 }
 0x221   :  { %395 = vmatmul.mubr.msk.f32.vlgmr.msra.gmra.mrb[2].mxu0 %vm105_vm2, %v423_v32 }
 0x2f4   :  { %v333_v35 = vpop.f32.mrb[2].mxu0 }
 0x2f5   :  { %v334_v36 = vadd.f32 %v333_v35, %v263_v34  ;;  %v396_v37 = vpop.f32.mrb[3].mxu0 }
 0x2f7   :  { %337 = vst.msk [vmem:[#allocation2] sm:$0xff] %vm31_vm1, %v334_v36 }
 0x2f8   :  { %435 = shalt.err (!%p432_p4)
}
 0x2f9   :  { %s436_s11 = scalar_lea.hbm %s554_s3, 128 }
 0x2fa   :  { %p437_p5 = scmp.ne.s32.totalorder %s554_s3, %s436_s11  ;;  %p440_p6 = scmp.lt.u32.totalorder %s436_s11, %s554_s3 }
 0x2fc   :  { %p442_p7 = pnand %p440_p6, %p437_p5 }
 0x2fe   :  { %445 = shalt.err (!%p442_p7)
}
 0x2ff   :  { %347 = dma.vmem_to_hbm [thread:$0]  %s345_s7, 128, %s554_s3, [#allocation3]  }
 0x300   :  { %446 = dma.done.wait [#allocation3], 128  }
 0x301   :  { %447 = vsyncadd [#allocation3], 4294967168 }
 0x302   :  { %351 = vsyncpa [#allocation3], 1 }

</bundles_post_ra>
